<compile_context>
chip_gen: v7x
topology: tpu7x:2x2x1
jax: 0.10.0
libtpu: 0.0.40
codegen_flags: <defaults>
</compile_context>

<pallas_src>
import math

import jax
import jax.numpy as jnp
from jax import lax
from jax.experimental import pallas as pl
from jax.experimental.pallas import tpu as pltpu

LANES = 128
SUBLANES = 8
MAX_C_PAD = 65536             # widest logical row allowed (8-row f32 block = 2 MiB)
TARGET_TILE_BYTES = 2 << 20   # ~2 MiB per input per pipeline buffer
VMEM_LIMIT_BYTES = 32 << 20   # fits every generation's physical VMEM with margin
_X_PAD = -1e4                 # (1-0)*(-1e4) + (log1p(exp(-1e4)) + 1e4) == 0.0 exactly


def _round_up(a, m):
    return ((a + m - 1) // m) * m


def _choose_layout(shape, n, pw_bshape):
    """Pick a copy-free 2-D view (R, C) of the input and how to feed pos_weight.

    Returns (kind, k, R, C, pw_mode):
      kind   : "flat" (n//128, 128), "split" (prod(shape[:k]), prod(shape[k:])),
               or "pad" (rare fallback that pads the flat array to a 128 multiple)
      pw_mode: "none" | "row" ((R,1) table) | "col" ((1,C) table) | "full"
    """
    ndim = len(shape)
    cands = []
    if n % LANES == 0 and n > 0:
        cands.append(("flat", None, n // LANES, LANES))
    for k in range(1, ndim):
        cands.append(("split", k, math.prod(shape[:k]), math.prod(shape[k:])))

    def _pw_mode(kind, k):
        if pw_bshape is None:
            return "none"
        if kind == "flat":
            return "row" if all(d == 1 for d in pw_bshape) else "full"
        if all(d == 1 for d in pw_bshape[k:]):
            return "row"
        if all(d == 1 for d in pw_bshape[:k]):
            return "col"
        return "full"

    best = None
    for kind, k, R, C in cands:
        if R == 0 or C == 0:
            continue
        c_pad = _round_up(C, LANES)
        if c_pad > MAX_C_PAD:
            continue
        mode = _pw_mode(kind, k)
        # prefer: no full pos_weight stream, then lane utilisation, then small C
        # (more row blocks -> better pipelining / megacore split).
        key = (0 if mode != "full" else 1, -(C / c_pad), C)
        if best is None or key < best[0]:
            best = (key, (kind, k, R, C, mode))
    if best is not None:
        return best[1]
    # Fallback (rare): pad the flat array up to the next 128 multiple (one copy).
    return ("pad", None, pl.cdiv(n, LANES), LANES,
            "none" if pw_bshape is None else "full")


@jax.jit
def bce_with_logits_loss(outputs, targets, pos_weight=None):
    """Mean-reduced binary cross-entropy with logits (Pallas TPU kernel)."""
    assert outputs.shape == targets.shape
    shape = tuple(outputs.shape)
    n = outputs.size

    pw_f32 = None
    pw_bshape = None
    if pos_weight is not None:
        pw_f32 = jnp.asarray(pos_weight, jnp.float32)
        pw_bshape = (1,) * (outputs.ndim - pw_f32.ndim) + tuple(pw_f32.shape)

    kind, k, R, C, pw_mode = _choose_layout(shape, n, pw_bshape)
    c_pad = _round_up(C, LANES)

    # ---------------- build the 2-D views (copy-free except "pad") ----------
    if kind == "pad":
        pad = R * C - n

        def _slab(a, v):
            flat = jnp.ravel(a)
            if pad:
                flat = jnp.pad(flat, (0, pad), constant_values=v)
            return flat.reshape(R, C)

        x2d = _slab(outputs, _X_PAD)
        y2d = _slab(targets, 0)
        pw2d = _slab(jnp.broadcast_to(pw_f32, shape), 1.0) if pw_mode == "full" else None
    else:
        x2d = jnp.reshape(outputs, (R, C))   # reshape only; original dtype on the wire
        y2d = jnp.reshape(targets, (R, C))
        pw2d = None
        if pw_mode == "row":
            if kind == "flat":               # scalar pos_weight
                pw2d = jnp.broadcast_to(jnp.reshape(pw_f32, ()), (R, 1))
            else:
                pw2d = jnp.broadcast_to(
                    jnp.reshape(pw_f32, pw_bshape[:k]), shape[:k]).reshape(R, 1)
        elif pw_mode == "col":
            pw2d = jnp.broadcast_to(
                jnp.reshape(pw_f32, pw_bshape[k:]), shape[k:]).reshape(1, C)
        elif pw_mode == "full":
            # TODO(synk): pos_weight varying along both collapsed row and lane dims
            # still streams a full-size broadcast (rare for this module's usage).
            pw2d = jnp.broadcast_to(pw_f32, shape).reshape(R, C)

    # ---------------- tiling / grid ----------------
    tile_r = max(SUBLANES,
                 (TARGET_TILE_BYTES // (c_pad * 4)) // SUBLANES * SUBLANES)
    tile_r = min(tile_r, _round_up(R, SUBLANES))
    nblk = pl.cdiv(R, tile_r)
    p = 2 if nblk >= 2 else 1            # megacore split (v7x); harmless on 1-TC chips
    t = pl.cdiv(nblk, p)
    need_mask = (p * t * tile_r != R)    # partial / duplicated edge blocks exist

    def _blk(pi, j):
        # clamp so a fully-out-of-range block (odd nblk with p=2) re-reads a valid
        # block; its contribution is zeroed by the in-kernel row mask.
        return jnp.minimum(pi * t + j, nblk - 1)

    in_specs = [pl.BlockSpec((tile_r, C), lambda pi, j: (_blk(pi, j), 0)),
                pl.BlockSpec((tile_r, C), lambda pi, j: (_blk(pi, j), 0))]
    inputs = [x2d, y2d]
    if pw2d is not None:
        if pw_mode == "row":
            in_specs.append(pl.BlockSpec((tile_r, 1), lambda pi, j: (_blk(pi, j), 0)))
        elif pw_mode == "col":
            in_specs.append(pl.BlockSpec((1, C), lambda pi, j: (0, 0)))
        else:  # full
            in_specs.append(pl.BlockSpec((tile_r, C), lambda pi, j: (_blk(pi, j), 0)))
        inputs.append(pw2d)

    # ---------------- kernel ----------------
    def kernel(*refs):
        if pw_mode == "none":
            x_ref, y_ref, out_ref = refs
            pw_ref = None
        else:
            x_ref, y_ref, pw_ref, out_ref = refs

        pi = pl.program_id(0)
        j = pl.program_id(1)

        @pl.when(j == 0)
        def _():
            out_ref[...] = jnp.zeros_like(out_ref)

        x = x_ref[...].astype(jnp.float32)
        y = y_ref[...].astype(jnp.float32)

        if need_mask:
            # Sanitize BEFORE the transcendentals: out-of-bounds edge rows hold
            # unspecified data; with x -> _X_PAD and y -> 0 their loss is exactly 0.
            row0 = (pi * t + j) * tile_r
            rows = lax.broadcasted_iota(jnp.int32, (tile_r, 1), 0) + row0
            valid = rows < R
            x = jnp.where(valid, x, _X_PAD)
            y = jnp.where(valid, y, 0.0)

        # PyTorch's grouping: (1-y)*x + w*(log1p(exp(-|x|)) + max(-x, 0)).
        sp_neg = jnp.log1p(jnp.exp(-jnp.abs(x))) + jnp.maximum(-x, 0.0)
        if pw_mode == "none":
            loss = (1.0 - y) * x + sp_neg
        else:
            pw = pw_ref[...].astype(jnp.float32)
            if need_mask and pw_mode in ("row", "full"):
                pw = jnp.where(valid, pw, 1.0)
            w = 1.0 + (pw - 1.0) * y
            loss = (1.0 - y) * x + w * sp_neg

        # Fold (tile_r, C) -> (8, C) with VALU-only vreg adds, then one XLU
        # lane-reduce to the resident (8, 1) output accumulator (P3 pattern).
        part = jnp.sum(loss.reshape(tile_r // SUBLANES, SUBLANES, C), axis=0)
        out_ref[...] += jnp.sum(part, axis=1, keepdims=True)

    partials = pl.pallas_call(
        kernel,
        out_shape=jax.ShapeDtypeStruct((p * SUBLANES, 1), jnp.float32),
        grid_spec=pltpu.PrefetchScalarGridSpec(
            num_scalar_prefetch=0,
            grid=(p, t),
            in_specs=in_specs,
            out_specs=pl.BlockSpec((SUBLANES, 1), lambda pi, j: (pi, 0)),
        ),
        compiler_params=pltpu.CompilerParams(
            dimension_semantics=("parallel", "arbitrary"),
            vmem_limit_bytes=VMEM_LIMIT_BYTES,
        ),
    )(*inputs)

    return jnp.sum(partials) / jnp.float32(n)


def _reference(outputs, targets, pos_weight=None):
    x = outputs.astype(jnp.float32)
    y = targets.astype(jnp.float32)
    sp = lambda v: jnp.maximum(v, 0.0) + jnp.log1p(jnp.exp(-jnp.abs(v)))
    if pos_weight is None:
        pw = jnp.ones_like(x)
    else:
        pw = jnp.broadcast_to(jnp.asarray(pos_weight, jnp.float32), x.shape)
    return jnp.mean(pw * y * sp(-x) + (1.0 - y) * sp(x))


if __name__ == "__main__":
    key = jax.random.PRNGKey(0)
    ks = jax.random.split(key, 8)

    def check(x, y, pw=None, name=""):
        got = bce_with_logits_loss(x, y, pos_weight=pw)
        jax.block_until_ready(got)
        ref = _reference(x, y, pw)
        assert jnp.allclose(got, ref, rtol=1e-5, atol=1e-6), (name, got, ref)

    # Small NCHW case (module default: pos_weight=None).
    x0 = jax.random.normal(ks[0], (2, 4, 16, 16), dtype=jnp.float32)
    y0 = (jax.random.uniform(ks[1], (2, 4, 16, 16)) > 0.5).astype(jnp.float32)
    check(x0, y0, name="small")

    # Per-channel pos_weight (fed as a tiny per-row table, not a full stream).
    pw_c = jnp.asarray([0.5, 1.0, 2.0, 3.0], jnp.float32).reshape(4, 1, 1)
    check(x0, y0, pw_c, name="pos_weight")

    # Total size not a multiple of 128: copy-free (R, C) collapse, no HBM pad pass.
    x1 = jax.random.normal(ks[2], (2, 4, 190, 190), dtype=jnp.float32)
    y1 = (jax.random.uniform(ks[3], (2, 4, 190, 190)) > 0.5).astype(jnp.float32)
    check(x1, y1, name="tail")

    # Awkward shape + broadcast pos_weight: exercises the in-kernel row mask and
    # the (1, C) pos_weight table.
    x2 = jax.random.normal(ks[4], (3, 5, 7, 6), dtype=jnp.float32)
    y2 = (jax.random.uniform(ks[5], (3, 5, 7, 6)) > 0.5).astype(jnp.float32)
    pw2 = jnp.asarray([2.0, 0.5, 1.0, 3.0, 1.5], jnp.float32).reshape(5, 1, 1)
    check(x2, y2, pw2, name="mask+colpw")

    # Multi-block / both-TensorCores path (2 row blocks, masked edge rows).
    x3 = jax.random.normal(ks[6], (16, 4, 96, 96), dtype=jnp.float32)
    y3 = (jax.random.uniform(ks[7], (16, 4, 96, 96)) > 0.5).astype(jnp.float32)
    check(x3, y3, name="multiblock")

    print("KERNEL_OK")
</pallas_src>

<mosaic_0001>
module attributes {stable_mosaic.version = 11 : i64} {
  func.func @kernel(%arg0: i32, %arg1: i32, %arg2: memref<16x128xf32, #tpu.memory_space<vmem>>, %arg3: memref<16x128xf32, #tpu.memory_space<vmem>>, %arg4: memref<8x1xf32, #tpu.memory_space<vmem>>) attributes {dimension_semantics = [#tpu.dimension_semantics<parallel>, #tpu.dimension_semantics<arbitrary>], iteration_bounds = array<i64: 1, 1>, scalar_prefetch = 0 : i64, scratch_operands = 0 : i64, tpu.core_type = #tpu.core_type<tc>, window_params = [{transform_indices = @transform_0, window_bounds = array<i64: 16, 128>}, {transform_indices = @transform_1, window_bounds = array<i64: 16, 128>}, {transform_indices = @transform_2, window_bounds = array<i64: 8, 1>}]} {
    %c0_i32 = arith.constant 0 : i32
    %0 = arith.cmpi eq, %arg1, %c0_i32 : i32
    %1 = arith.extui %0 : i1 to i32
    %c0_i32_0 = arith.constant 0 : i32
    %2 = arith.cmpi ne, %1, %c0_i32_0 : i32
    scf.if %2 {
      %cst_13 = arith.constant 0.000000e+00 : f32
      %26 = vector.broadcast %cst_13 : f32 to vector<8x1xf32>
      %c0_14 = arith.constant 0 : index
      %c0_15 = arith.constant 0 : index
      %27 = vector.load %arg4[%c0_14, %c0_15] : memref<8x1xf32, #tpu.memory_space<vmem>>, vector<8x1xf32>
      tpu.vector_store %arg4[%c0_14, %c0_15], %26 {strides = array<i32>} : memref<8x1xf32, #tpu.memory_space<vmem>>, vector<8x1xf32>,
    } else {
    }
    %c0 = arith.constant 0 : index
    %c0_1 = arith.constant 0 : index
    %3 = vector.load %arg2[%c0, %c0_1] : memref<16x128xf32, #tpu.memory_space<vmem>>, vector<16x128xf32>
    %c0_2 = arith.constant 0 : index
    %c0_3 = arith.constant 0 : index
    %4 = vector.load %arg3[%c0_2, %c0_3] : memref<16x128xf32, #tpu.memory_space<vmem>>, vector<16x128xf32>
    %5 = math.absf %3 : vector<16x128xf32>
    %cst = arith.constant 0.000000e+00 : f32
    %6 = vector.broadcast %cst : f32 to vector<16x128xf32>
    %7 = arith.subf %6, %5 : vector<16x128xf32>
    %8 = math.exp %7 : vector<16x128xf32>
    %9 = math.log1p %8 : vector<16x128xf32>
    %cst_4 = arith.constant 0.000000e+00 : f32
    %10 = vector.broadcast %cst_4 : f32 to vector<16x128xf32>
    %11 = arith.subf %10, %3 : vector<16x128xf32>
    %cst_5 = arith.constant 0.000000e+00 : f32
    %12 = vector.broadcast %cst_5 : f32 to vector<16x128xf32>
    %13 = arith.maximumf %11, %12 : vector<16x128xf32>
    %14 = arith.addf %9, %13 : vector<16x128xf32>
    %cst_6 = arith.constant 1.000000e+00 : f32
    %15 = vector.broadcast %cst_6 : f32 to vector<16x128xf32>
    %16 = arith.subf %15, %4 : vector<16x128xf32>
    %17 = arith.mulf %16, %3 : vector<16x128xf32>
    %18 = arith.addf %17, %14 : vector<16x128xf32>
    %19 = vector.shape_cast %18 : vector<16x128xf32> to vector<2x8x128xf32>
    %cst_7 = arith.constant dense<0.000000e+00> : vector<8x128xf32>
    %20 = vector.multi_reduction <add>, %19, %cst_7 [0] : vector<2x8x128xf32> to vector<8x128xf32>
    %c0_8 = arith.constant 0 : index
    %c0_9 = arith.constant 0 : index
    %21 = vector.load %arg4[%c0_8, %c0_9] : memref<8x1xf32, #tpu.memory_space<vmem>>, vector<8x1xf32>
    %cst_10 = arith.constant dense<0.000000e+00> : vector<8xf32>
    %22 = vector.multi_reduction <add>, %20, %cst_10 [1] : vector<8x128xf32> to vector<8xf32>
    %23 = vector.shape_cast %22 : vector<8xf32> to vector<8x1xf32>
    %24 = arith.addf %21, %23 : vector<8x1xf32>
    %c0_11 = arith.constant 0 : index
    %c0_12 = arith.constant 0 : index
    %25 = vector.load %arg4[%c0_11, %c0_12] : memref<8x1xf32, #tpu.memory_space<vmem>>, vector<8x1xf32>
    tpu.vector_store %arg4[%c0_11, %c0_12], %24 {strides = array<i32>} : memref<8x1xf32, #tpu.memory_space<vmem>>, vector<8x1xf32>,
    return
  }
  func.func @transform_0(%arg0: i32, %arg1: i32) -> (i32, i32) {
    %c1_i32 = arith.constant 1 : i32
    %0 = arith.muli %arg0, %c1_i32 : i32
    %1 = arith.addi %0, %arg1 : i32
    %c0_i32 = arith.constant 0 : i32
    %2 = arith.minsi %1, %c0_i32 : i32
    %c0_i32_0 = arith.constant 0 : i32
    %c0_i32_1 = arith.constant 0 : i32
    return %2, %c0_i32_0 : i32, i32
  }
  func.func @transform_1(%arg0: i32, %arg1: i32) -> (i32, i32) {
    %c1_i32 = arith.constant 1 : i32
    %0 = arith.muli %arg0, %c1_i32 : i32
    %1 = arith.addi %0, %arg1 : i32
    %c0_i32 = arith.constant 0 : i32
    %2 = arith.minsi %1, %c0_i32 : i32
    %c0_i32_0 = arith.constant 0 : i32
    %c0_i32_1 = arith.constant 0 : i32
    return %2, %c0_i32_0 : i32, i32
  }
  func.func @transform_2(%arg0: i32, %arg1: i32) -> (i32, i32) {
    %c0_i32 = arith.constant 0 : i32
    %c0_i32_0 = arith.constant 0 : i32
    return %arg0, %c0_i32 : i32, i32
  }
}

</mosaic_0001>

<bundles_post_ra>
// kernel: bce_with_logits_loss.1
= control target key start
LH: loop header
LB: loop body
LE: loop exit
PB: predicated region body
PF: predicated region fallthrough
CT: control target
= control target key end

     0   :  { %vm79_vm0 = vcmask 7168   ;;  %v155_v2 = vmov 0.0   ;;  %s194_s0 = inlined_call_operand.vmem [shape: f32[16,128], index: 0, kind: input, shape index: {}]   ;;  %s195_s2 = inlined_call_operand.vmem [shape: f32[8,1], index: 2, kind: output, shape index: {}]   ;;  %s196_s1 = inlined_call_operand.vmem [shape: f32[16,128], index: 1, kind: input, shape index: {}]  }
   0x1   :  { %v81_v0 = vld [vmem:[%s194_s0] sm:$0xff]  ;;  %v82_v1 = vld [vmem:[%s194_s0 + $0x8] sm:$0xff]  ;;  %80 = vst.msk [vmem:[%s195_s2] sm:$0xff] %vm79_vm0, %v155_v2 }
   0x2   :  { %v85_v3 = vand.u32 2147483647, %v81_v0  ;;  %v86_v4 = vand.u32 2147483647, %v82_v1  ;;  %v83_v15 = vld [vmem:[%s196_s1] sm:$0xff]  ;;  %v84_v17 = vld [vmem:[%s196_s1 + $0x8] sm:$0xff] }
   0x3   :  { %v111_v20 = vsub.f32 0.0, %v81_v0  ;;  %v112_v22 = vsub.f32 0.0, %v82_v1  ;;  %v117_v23 = vsub.f32 1.0, %v83_v15  ;;  %v118_v25 = vsub.f32 1.0, %v84_v17 }
   0x4   :  { %v87_v5 = vsub.f32 0.0, %v85_v3  ;;  %v88_v6 = vsub.f32 0.0, %v86_v4 }
   0x5   :  { %v113_v28 = vmax.f32 %v111_v20, 0.0  ;;  %v114_v31 = vmax.f32 %v112_v22, 0.0  ;;  %v119_v33 = vmul.f32 %v117_v23, %v81_v0  ;;  %v120_v35 = vmul.f32 %v118_v25, %v82_v1 }
   0x6   :  { %v89_v7 = vmul.f32 1.442695, %v87_v5  ;;  %v91_v8 = vmul.f32 1.442695, %v88_v6 }
   0x8   :  { %147 = vpow2.f32 %v89_v7  ;;  %v124_v42 = vld [vmem:[%s195_s2] sm:$0xff] }
   0x9   :  { %149 = vpow2.f32 %v91_v8 }
  0x12   :  { %v148_v9 = vpop.eup %147 }
  0x13   :  { %v150_v10 = vpop.eup %149  ;;  %v93_v11 = vadd.f32 1.0, %v148_v9  ;;  %v96_v13 = vmul.f32 -0.5, %v148_v9  ;;  %v99_v18 = vand.u32 2147483647, %v148_v9 }
  0x14   :  { %v102_v12 = vadd.f32 1.0, %v150_v10  ;;  %v105_v14 = vmul.f32 -0.5, %v150_v10  ;;  %v108_v21 = vand.u32 2147483647, %v150_v10 }
  0x15   :  { %151 = vlog2.f32 %v93_v11  ;;  %v97_v16 = vadd.f32 1.0, %v96_v13  ;;  %vm100_vm1 = vcmp.lt.f32.partialorder %v99_v18, 0.0004427343 }
  0x16   :  { %153 = vlog2.f32 %v102_v12  ;;  %v106_v19 = vadd.f32 1.0, %v105_v14  ;;  %vm109_vm2 = vcmp.lt.f32.partialorder %v108_v21, 0.0004427343 }
  0x17   :  { %v98_v24 = vmul.f32 %v148_v9, %v97_v16 }
  0x18   :  { %v107_v27 = vmul.f32 %v150_v10, %v106_v19 }
  0x1f   :  { %v152_v26 = vpop.eup %151 }
  0x20   :  { %v154_v29 = vpop.eup %153  ;;  %v95_v30 = vmul.f32 0.6931472, %v152_v26 }
  0x21   :  { %v104_v32 = vmul.f32 0.6931472, %v154_v29 }
  0x22   :  { %v101_v34 = vsel %vm100_vm1, %v98_v24, %v95_v30 }
  0x23   :  { %v110_v36 = vsel %vm109_vm2, %v107_v27, %v104_v32  ;;  %v115_v37 = vadd.f32 %v113_v28, %v101_v34 }
  0x24   :  { %v116_v38 = vadd.f32 %v114_v31, %v110_v36 }
  0x25   :  { %v121_v39 = vadd.f32 %v119_v33, %v115_v37 }
  0x26   :  { %v122_v40 = vadd.f32 %v120_v35, %v116_v38 }
  0x28   :  { %v123_v41 = vadd.f32 %v122_v40, %v121_v39 }
  0x2a   :  { %125 = vadd.xlane.f32.xlu0 %v123_v41 }
  0xb7   :  { %v126_v43 = vpop.xlane.xlu0 %125 }
  0xb8   :  { %v127_v44 = vadd.f32 %v126_v43, %v124_v42 }
  0xba   :  { %129 = vst.msk [vmem:[%s195_s2] sm:$0xff] %vm79_vm0, %v127_v44 }

</bundles_post_ra>
